<compile_context>
chip_gen: v7x
topology: tpu7x:2x2x1
jax: 0.10.0
libtpu: 0.0.40
codegen_flags: <defaults>
</compile_context>

<pallas_src>
import functools
import math

import jax
import jax.numpy as jnp
from jax.experimental import pallas as pl
from jax.experimental.pallas import tpu as pltpu


def _pad_to(n: int, m: int) -> int:
    return ((n + m - 1) // m) * m


def rnn_cell_kernel(x_ref, h0_ref, wu_ref, ww_ref, wv_ref, h_ref, y_ref, *,
                    hid_dim, out_dim):
    # Cast activations to bf16 in-kernel (cheap VPU op) -- no wrapper packing.
    xb = x_ref[...].astype(wu_ref.dtype)
    hb = h0_ref[...].astype(ww_ref.dtype)
    # pre = x @ Wu^T + h0 @ Ww^T : two MXU passes, bf16-in / f32-accumulate.
    pre = jnp.dot(xb, wu_ref[...], preferred_element_type=jnp.float32)
    pre = pre + jnp.dot(hb, ww_ref[...], preferred_element_type=jnp.float32)
    h = jnp.tanh(pre)                                   # f32 on the EUP, (bt, hid_pad)
    # y = h @ Wv^T  (bf16 operand, f32 accumulate), (bt, out_pad).
    y = jnp.dot(h.astype(wv_ref.dtype), wv_ref[...],
                preferred_element_type=jnp.float32)
    # Two separate, unpadded outputs (no wrapper-side slice / cast afterwards).
    h_ref[...] = h[:, :hid_dim].astype(h_ref.dtype)
    y_ref[...] = y[:, :out_dim].astype(y_ref.dtype)


def prepare_rnn_params(u_weight, w_weight, v_weight, param_dtype=jnp.bfloat16):
    """One-time weight prep: fold transpose, 128-lane padding and the bf16 cast
    into parameter creation so nothing runs per call."""
    hid_dim, in_dim = u_weight.shape          # PyTorch Linear layout [out, in]
    out_dim = v_weight.shape[0]
    hid_pad = _pad_to(hid_dim, 128)
    out_pad = _pad_to(out_dim, 128)

    wu_p = jnp.zeros((in_dim, hid_pad), param_dtype)
    wu_p = wu_p.at[:, :hid_dim].set(u_weight.T.astype(param_dtype))

    ww_p = jnp.zeros((hid_dim, hid_pad), param_dtype)
    ww_p = ww_p.at[:, :hid_dim].set(w_weight.T.astype(param_dtype))

    wv_p = jnp.zeros((hid_pad, out_pad), param_dtype)
    wv_p = wv_p.at[:hid_dim, :out_dim].set(v_weight.T.astype(param_dtype))

    dims = dict(in_dim=in_dim, hid_dim=hid_dim, out_dim=out_dim,
                hid_pad=hid_pad, out_pad=out_pad)
    return wu_p, ww_p, wv_p, dims


def rnn_forward(x, h0, wu_p, ww_p, wv_p, dims):
    """Pallas equivalent of RNN.forward (bias=False, single cell).

    x:  [batch, in_dim] (f32)   h0: [batch, hid_dim] (f32)
    returns (y [batch, out_dim], h [batch, hid_dim]) in x.dtype.
    """
    in_dim, hid_dim, out_dim = dims["in_dim"], dims["hid_dim"], dims["out_dim"]
    hid_pad, out_pad = dims["hid_pad"], dims["out_pad"]
    batch = x.shape[0]

    # Batch tiling: whole-batch single block for small batches (zero wrapper
    # padding), 128-row tiles for large batches (fills the MXU, shards the
    # "parallel" grid axis across TensorCores on v7x).
    if batch >= 256:
        bt = 128
        b_pad = _pad_to(batch, bt)
        if b_pad != batch:
            pad = ((0, b_pad - batch), (0, 0))
            x = jnp.pad(x, pad)
            h0 = jnp.pad(h0, pad)
    else:
        bt = batch
        b_pad = batch
    grid = (b_pad // bt,)

    # Explicit VMEM budget (weights single-buffered, activations double-buffered).
    weight_bytes = (wu_p.size + ww_p.size + wv_p.size) * 2            # bf16
    io_bytes = 2 * bt * (in_dim + 2 * hid_dim + out_dim) * 4          # dbl-buf f32 blocks
    scratch_bytes = 2 * bt * (hid_pad + out_pad) * 4                  # f32 intermediates
    vmem_limit = int(min(64 * 2 ** 20,
                         max(4 * 2 ** 20,
                             2 * (weight_bytes + io_bytes + scratch_bytes))))

    cost = pl.CostEstimate(
        flops=(2 * b_pad * in_dim * hid_pad
               + 2 * b_pad * hid_dim * hid_pad
               + 2 * b_pad * hid_pad * out_pad),
        transcendentals=b_pad * hid_pad,
        bytes_accessed=(x.size * 4 + h0.size * 4
                        + weight_bytes
                        + b_pad * (hid_dim + out_dim) * 4),
    )

    h_out, y_out = pl.pallas_call(
        functools.partial(rnn_cell_kernel, hid_dim=hid_dim, out_dim=out_dim),
        out_shape=(jax.ShapeDtypeStruct((b_pad, hid_dim), x.dtype),
                   jax.ShapeDtypeStruct((b_pad, out_dim), x.dtype)),
        grid=grid,
        in_specs=[
            pl.BlockSpec((bt, in_dim), lambda i: (i, 0)),             # x tile
            pl.BlockSpec((bt, hid_dim), lambda i: (i, 0)),            # h0 tile
            pl.BlockSpec((in_dim, hid_pad), lambda i: (0, 0),         # Wu^T (resident)
                         pipeline_mode=pl.Buffered(1)),
            pl.BlockSpec((hid_dim, hid_pad), lambda i: (0, 0),        # Ww^T (resident)
                         pipeline_mode=pl.Buffered(1)),
            pl.BlockSpec((hid_pad, out_pad), lambda i: (0, 0),        # Wv^T (resident)
                         pipeline_mode=pl.Buffered(1)),
        ],
        out_specs=(pl.BlockSpec((bt, hid_dim), lambda i: (i, 0)),
                   pl.BlockSpec((bt, out_dim), lambda i: (i, 0))),
        compiler_params=pltpu.CompilerParams(
            dimension_semantics=("parallel",),
            vmem_limit_bytes=vmem_limit),
        cost_estimate=cost,
    )(x, h0, wu_p, ww_p, wv_p)

    if b_pad != batch:
        h_out = h_out[:batch]
        y_out = y_out[:batch]
    return y_out, h_out


def init_linear_weight(key, out_features, in_features):
    # Matches nn.Linear default init: U(-1/sqrt(fan_in), 1/sqrt(fan_in)).
    bound = 1.0 / math.sqrt(in_features)
    return jax.random.uniform(
        key, (out_features, in_features), jnp.float32, minval=-bound, maxval=bound
    )


if __name__ == "__main__":
    # Small shapes implied by the module: x is [batch, in_dim].
    batch, in_dim, hid_dim, out_dim = 4, 8, 32, 4

    key = jax.random.PRNGKey(0)
    kx, ku, kw, kv = jax.random.split(key, 4)

    x = jax.random.normal(kx, (batch, in_dim), jnp.float32)
    h0 = jnp.zeros((batch, hid_dim), jnp.float32)          # self.init_hidden()

    u_weight = init_linear_weight(ku, hid_dim, in_dim)     # self.u  [hid, in]
    w_weight = init_linear_weight(kw, hid_dim, hid_dim)    # self.w  [hid, hid]
    v_weight = init_linear_weight(kv, out_dim, hid_dim)    # self.v  [out, hid]

    # One-time weight prep (transposed / 128-padded / bf16).
    wu_p, ww_p, wv_p, dims = prepare_rnn_params(u_weight, w_weight, v_weight)

    y, h = rnn_forward(x, h0, wu_p, ww_p, wv_p, dims)
    jax.block_until_ready((y, h))

    # Pure-JAX f32 reference (kernel matmuls are bf16-in / f32-accumulate,
    # so use a tolerance appropriate for bf16 operand rounding).
    h_ref = jnp.tanh(x @ u_weight.T + h0 @ w_weight.T)
    y_ref = h_ref @ v_weight.T
    assert jnp.allclose(h, h_ref, atol=2e-2, rtol=2e-2), "h mismatch"
    assert jnp.allclose(y, y_ref, atol=2e-2, rtol=2e-2), "y mismatch"

    print("KERNEL_OK")
</pallas_src>

<mosaic_0001>
module attributes {stable_mosaic.version = 11 : i64} {
  func.func @rnn_cell_kernel(%arg0: i32, %arg1: memref<4x8xf32, #tpu.memory_space<vmem>>, %arg2: memref<4x32xf32, #tpu.memory_space<vmem>>, %arg3: memref<8x128xbf16, #tpu.memory_space<vmem>>, %arg4: memref<32x128xbf16, #tpu.memory_space<vmem>>, %arg5: memref<128x128xbf16, #tpu.memory_space<vmem>>, %arg6: memref<4x32xf32, #tpu.memory_space<vmem>>, %arg7: memref<4x4xf32, #tpu.memory_space<vmem>>) attributes {dimension_semantics = [#tpu.dimension_semantics<parallel>], iteration_bounds = array<i64: 1>, scalar_prefetch = 0 : i64, scratch_operands = 0 : i64, tpu.core_type = #tpu.core_type<tc>, window_params = [{transform_indices = @transform_0, window_bounds = array<i64: 4, 8>}, {transform_indices = @transform_1, window_bounds = array<i64: 4, 32>}, {pipeline_mode = #tpu.pipeline_mode<synchronous>, transform_indices = @transform_2, window_bounds = array<i64: 8, 128>}, {pipeline_mode = #tpu.pipeline_mode<synchronous>, transform_indices = @transform_3, window_bounds = array<i64: 32, 128>}, {pipeline_mode = #tpu.pipeline_mode<synchronous>, transform_indices = @transform_4, window_bounds = array<i64: 128, 128>}, {transform_indices = @transform_5, window_bounds = array<i64: 4, 32>}, {transform_indices = @transform_6, window_bounds = array<i64: 4, 4>}]} {
    %c0 = arith.constant 0 : index
    %c0_0 = arith.constant 0 : index
    %0 = vector.load %arg1[%c0, %c0_0] : memref<4x8xf32, #tpu.memory_space<vmem>>, vector<4x8xf32>
    %1 = arith.truncf %0 : vector<4x8xf32> to vector<4x8xbf16>
    %c0_1 = arith.constant 0 : index
    %c0_2 = arith.constant 0 : index
    %2 = vector.load %arg2[%c0_1, %c0_2] : memref<4x32xf32, #tpu.memory_space<vmem>>, vector<4x32xf32>
    %3 = arith.truncf %2 : vector<4x32xf32> to vector<4x32xbf16>
    %c0_3 = arith.constant 0 : index
    %c0_4 = arith.constant 0 : index
    %4 = vector.load %arg3[%c0_3, %c0_4] : memref<8x128xbf16, #tpu.memory_space<vmem>>, vector<8x128xbf16>
    %cst = arith.constant dense<0.000000e+00> : vector<4x128xf32>
    %5 = tpu.matmul %1, %4, %cst {dimension_numbers = #tpu.dot_dimension_numbers<[1], [0], [0], [1], [0, 0, 1, 1], [], []>} : vector<4x8xbf16>, vector<8x128xbf16>, vector<4x128xf32> -> vector<4x128xf32>
    %c0_5 = arith.constant 0 : index
    %c0_6 = arith.constant 0 : index
    %6 = vector.load %arg4[%c0_5, %c0_6] : memref<32x128xbf16, #tpu.memory_space<vmem>>, vector<32x128xbf16>
    %cst_7 = arith.constant dense<0.000000e+00> : vector<4x128xf32>
    %7 = tpu.matmul %3, %6, %cst_7 {dimension_numbers = #tpu.dot_dimension_numbers<[1], [0], [0], [1], [0, 0, 1, 1], [], []>} : vector<4x32xbf16>, vector<32x128xbf16>, vector<4x128xf32> -> vector<4x128xf32>
    %8 = arith.addf %5, %7 : vector<4x128xf32>
    %9 = math.tanh %8 : vector<4x128xf32>
    %10 = arith.truncf %9 : vector<4x128xf32> to vector<4x128xbf16>
    %c0_8 = arith.constant 0 : index
    %c0_9 = arith.constant 0 : index
    %11 = vector.load %arg5[%c0_8, %c0_9] : memref<128x128xbf16, #tpu.memory_space<vmem>>, vector<128x128xbf16>
    %cst_10 = arith.constant dense<0.000000e+00> : vector<4x128xf32>
    %12 = tpu.matmul %10, %11, %cst_10 {dimension_numbers = #tpu.dot_dimension_numbers<[1], [0], [0], [1], [0, 0, 1, 1], [], []>} : vector<4x128xbf16>, vector<128x128xbf16>, vector<4x128xf32> -> vector<4x128xf32>
    %13 = vector.extract_strided_slice %9 {offsets = [0, 0], sizes = [4, 32], strides = [1, 1]} : vector<4x128xf32> to vector<4x32xf32>
    %c0_11 = arith.constant 0 : index
    %c0_12 = arith.constant 0 : index
    %14 = vector.load %arg6[%c0_11, %c0_12] : memref<4x32xf32, #tpu.memory_space<vmem>>, vector<4x32xf32>
    tpu.vector_store %arg6[%c0_11, %c0_12], %13 {strides = array<i32>} : memref<4x32xf32, #tpu.memory_space<vmem>>, vector<4x32xf32>,
    %15 = vector.extract_strided_slice %12 {offsets = [0, 0], sizes = [4, 4], strides = [1, 1]} : vector<4x128xf32> to vector<4x4xf32>
    %c0_13 = arith.constant 0 : index
    %c0_14 = arith.constant 0 : index
    %16 = vector.load %arg7[%c0_13, %c0_14] : memref<4x4xf32, #tpu.memory_space<vmem>>, vector<4x4xf32>
    tpu.vector_store %arg7[%c0_13, %c0_14], %15 {strides = array<i32>} : memref<4x4xf32, #tpu.memory_space<vmem>>, vector<4x4xf32>,
    return
  }
  func.func @transform_0(%arg0: i32) -> (i32, i32) {
    %c0_i32 = arith.constant 0 : i32
    %c0_i32_0 = arith.constant 0 : i32
    return %arg0, %c0_i32 : i32, i32
  }
  func.func @transform_1(%arg0: i32) -> (i32, i32) {
    %c0_i32 = arith.constant 0 : i32
    %c0_i32_0 = arith.constant 0 : i32
    return %arg0, %c0_i32 : i32, i32
  }
  func.func @transform_2(%arg0: i32) -> (i32, i32) {
    %c0_i32 = arith.constant 0 : i32
    %c0_i32_0 = arith.constant 0 : i32
    %c0_i32_1 = arith.constant 0 : i32
    return %c0_i32, %c0_i32_0 : i32, i32
  }
  func.func @transform_3(%arg0: i32) -> (i32, i32) {
    %c0_i32 = arith.constant 0 : i32
    %c0_i32_0 = arith.constant 0 : i32
    %c0_i32_1 = arith.constant 0 : i32
    return %c0_i32, %c0_i32_0 : i32, i32
  }
  func.func @transform_4(%arg0: i32) -> (i32, i32) {
    %c0_i32 = arith.constant 0 : i32
    %c0_i32_0 = arith.constant 0 : i32
    %c0_i32_1 = arith.constant 0 : i32
    return %c0_i32, %c0_i32_0 : i32, i32
  }
  func.func @transform_5(%arg0: i32) -> (i32, i32) {
    %c0_i32 = arith.constant 0 : i32
    %c0_i32_0 = arith.constant 0 : i32
    return %arg0, %c0_i32 : i32, i32
  }
  func.func @transform_6(%arg0: i32) -> (i32, i32) {
    %c0_i32 = arith.constant 0 : i32
    %c0_i32_0 = arith.constant 0 : i32
    return %arg0, %c0_i32 : i32, i32
  }
}

</mosaic_0001>

<bundles_post_ra>
// kernel: tpu_custom_call.1
= control target key start
LH: loop header
LB: loop body
LE: loop exit
PB: predicated region body
PF: predicated region fallthrough
CT: control target
= control target key end

     0   :  { %12 = vsyncpa [#allocation3], 0  ;;  %s681_s0 = inlined_call_operand.hbm [shape: f32[4,8], index: 0, kind: input, shape index: {}]   ;;  %s682_s1 = inlined_call_operand.hbm [shape: f32[4,32], index: 1, kind: input, shape index: {}]   ;;  %s683_s2 = inlined_call_operand.vmem [shape: bf16[8,128], index: 2, kind: input, shape index: {}]   ;;  %s684_s3 = inlined_call_operand.hbm [shape: bf16[32,128], index: 3, kind: input, shape index: {}]   ;;  %s685_s4 = inlined_call_operand.hbm [shape: bf16[128,128], index: 4, kind: input, shape index: {}]   ;;  %s686_s5 = inlined_call_operand.hbm [shape: f32[4,32], index: 5, kind: output, shape index: {0}]   ;;  %s687_s6 = inlined_call_operand.hbm [shape: f32[4,4], index: 6, kind: output, shape index: {1}]  }
   0x1   :  { %13 = vsyncpa [#allocation6], 0 }
   0x2   :  { %14 = vsyncpa [#allocation9], 0 }
   0x3   :  { %15 = vsyncpa [#allocation4], 0 }
   0x4   :  { %16 = vsyncpa [#allocation12], 0  ;;  %s558_s21 = smov [#allocation5]   ;;  %s559_s23 = smov [#allocation2]  }
   0x5   :  { %s33_s22 = sshll.u32 %s558_s21, 4  ;;  %s23_s24 = sshll.u32 %s559_s23, 4  ;;  %s34_s22 = int_to_ptr.vmem [resolvable:$true] %s33_s22  ;;  %s24_s24 = int_to_ptr.vmem [resolvable:$true] %s23_s24 }
   0x6   :  { %s416_s27 = scalar_lea.hbm %s682_s1, 64 }
   0x7   :  { %p417_p0 = scmp.ne.s32.totalorder %s682_s1, %s416_s27  ;;  %p420_p1 = scmp.lt.u32.totalorder %s416_s27, %s682_s1 }
   0x9   :  { %p422_p2 = pnand %p420_p1, %p417_p0 }
   0xb   :  { %425 = shalt.err (!%p422_p2)
}
   0xc   :  { %s426_s8 = scalar_lea.vmem %s34_s22, 64  ;;  %p431_p4 = scmp.lt.s32.totalorder %s34_s22, %s34_s22 }
   0xd   :  { %p427_p3 = scmp.ne.s32.totalorder %s34_s22, %s426_s8  ;;  %p432_p5 = scmp.lt.s32.totalorder %s426_s8, %s426_s8 }
   0xf   :  { %p433_p6 = por %p432_p5, %p431_p4 }
  0x11   :  { %p434_p7 = pnand %p433_p6, %p427_p3 }
  0x13   :  { %437 = shalt.err (!%p434_p7)
}
  0x14   :  { %36 = dma.hbm_to_vmem [thread:$0]  %s682_s1, 64, %s34_s22, [#allocation6]  }
  0x15   :  { %s438_s13 = scalar_lea.hbm %s681_s0, 64 }
  0x16   :  { %p439_p8 = scmp.ne.s32.totalorder %s681_s0, %s438_s13  ;;  %p442_p9 = scmp.lt.u32.totalorder %s438_s13, %s681_s0 }
  0x18   :  { %p444_p10 = pnand %p442_p9, %p439_p8 }
  0x1a   :  { %447 = shalt.err (!%p444_p10)
}
  0x1b   :  { %s448_s18 = scalar_lea.vmem %s24_s24, 64  ;;  %p453_p12 = scmp.lt.s32.totalorder %s24_s24, %s24_s24 }
  0x1c   :  { %p449_p11 = scmp.ne.s32.totalorder %s24_s24, %s448_s18  ;;  %p454_p13 = scmp.lt.s32.totalorder %s448_s18, %s448_s18 }
  0x1e   :  { %p455_p0 = por %p454_p13, %p453_p12 }
  0x20   :  { %p456_p1 = pnand %p455_p0, %p449_p11 }
  0x22   :  { %459 = shalt.err (!%p456_p1)
}
  0x23   :  { %26 = dma.hbm_to_vmem [thread:$0]  %s681_s0, 64, %s24_s24, [#allocation3]  }
  0x24   :  { %s560_s20 = smov [#allocation7]   ;;  %s460_s25 = scalar_lea.hbm %s684_s3, 256 }
  0x25   :  { %s44_s21 = sshll.u32 %s560_s20, 4  ;;  %p461_p2 = scmp.ne.s32.totalorder %s684_s3, %s460_s25  ;;  %s45_s21 = int_to_ptr.vmem [resolvable:$true] %s44_s21 }
  0x26   :  { %p464_p3 = scmp.lt.u32.totalorder %s460_s25, %s684_s3 }
  0x28   :  { %p466_p4 = pnand %p464_p3, %p461_p2 }
  0x2a   :  { %469 = shalt.err (!%p466_p4)
}
  0x2b   :  { %s470_s30 = scalar_lea.vmem %s45_s21, 256  ;;  %p475_p6 = scmp.lt.s32.totalorder %s45_s21, %s45_s21 }
  0x2c   :  { %p471_p5 = scmp.ne.s32.totalorder %s45_s21, %s470_s30  ;;  %p476_p7 = scmp.lt.s32.totalorder %s470_s30, %s470_s30 }
  0x2e   :  { %p477_p8 = por %p476_p7, %p475_p6 }
  0x30   :  { %p478_p9 = pnand %p477_p8, %p471_p5 }
  0x32   :  { %481 = shalt.err (!%p478_p9)
}
  0x33   :  { %s561_s0 = smov 64   ;;  %s562_s24 = smov 4  }
  0x34   :  { %50 = dma.hbm_to_vmem [thread:$0]  %s684_s3, 256, %s45_s21, [#allocation6], %s561_s0, %s561_s0, %s562_s24  }
  0x35   :  { %s563_s9 = smov [#allocation8]   ;;  %s482_s13 = scalar_lea.hbm %s685_s4, 1024 }
  0x36   :  { %s56_s10 = sshll.u32 %s563_s9, 4  ;;  %p483_p10 = scmp.ne.s32.totalorder %s685_s4, %s482_s13  ;;  %s57_s10 = int_to_ptr.vmem [resolvable:$true] %s56_s10 }
  0x37   :  { %p486_p11 = scmp.lt.u32.totalorder %s482_s13, %s685_s4 }
  0x39   :  { %p488_p12 = pnand %p486_p11, %p483_p10 }
  0x3b   :  { %491 = shalt.err (!%p488_p12)
}
  0x3c   :  { %s492_s18 = scalar_lea.vmem %s57_s10, 1024  ;;  %p497_p0 = scmp.lt.s32.totalorder %s57_s10, %s57_s10 }
  0x3d   :  { %p493_p13 = scmp.ne.s32.totalorder %s57_s10, %s492_s18  ;;  %p498_p1 = scmp.lt.s32.totalorder %s492_s18, %s492_s18 }
  0x3f   :  { %p499_p2 = por %p498_p1, %p497_p0 }
  0x41   :  { %p500_p3 = pnand %p499_p2, %p493_p13 }
  0x43   :  { %503 = shalt.err (!%p500_p3)
}
  0x44   :  { %62 = dma.hbm_to_vmem [thread:$0]  %s685_s4, 1024, %s57_s10, [#allocation9], %s561_s0, %s561_s0, %s562_s24  }
  0x45   :  { %548 = dma.done.wait [#allocation3], 64  }
  0x46   :  { %549 = vsyncadd [#allocation3], 4294967232 }
  0x47   :  { %550 = dma.done.wait [#allocation6], 320  }
  0x48   :  { %551 = vsyncadd [#allocation6], 4294966976 }
  0x49   :  { %552 = dma.done.wait [#allocation9], 1024  }
  0x4a   :  { %553 = vsyncadd [#allocation9], 4294966272  ;;  %v564_v0 = vmov 0.0   ;;  %vm565_vm0 = vmmov 0   ;;  %v404_v1 = vld [vmem:[#allocation7] sm:$0xff]   ;;  %v405_v2 = vld [vmem:[#allocation7 + $0x8] sm:$0xff]  }
  0x4b   :  { %356 = vmatprep.subr.bf16.mxu0 %v564_v0  ;;  %360 = vmatprep.mubr.msk.bf16.mxu0 %vm565_vm0, %v564_v0  ;;  %v78_v3 = vld [vmem:[#allocation5] sm:$0xf]  ;;  %vm145_vm1 = vcmask 1043456   ;;  %v406_v4 = vld [vmem:[#allocation8] sm:$0xff]   ;;  %v80_v5 = vld [vmem:[%s683_s2] sm:$0xf] }
  0x4c   :  { %370 = vmatprep.subr.bf16.mxu1 %v564_v0  ;;  %386 = vmatprep.mubr.msk.bf16.mxu1 %vm565_vm0, %v564_v0  ;;  %v79_v6 = vpack.c.bf16 %v78_v3, %v78_v3  ;;  %v407_v7 = vld [vmem:[#allocation8 + $0x8] sm:$0xff]   ;;  %vm97_vm2 = vcmask 261120   ;;  %v147_v8 = vsel %vm145_vm1, %v80_v5, 0  ;;  %v408_v9 = vld [vmem:[#allocation8 + $0x10] sm:$0xff]   ;;  %v409_v10 = vld [vmem:[#allocation8 + $0x18] sm:$0xff]   ;;  %vm141_vm3 = vcmask 64512  }
  0x4d   :  { %357 = vmatpush3.bf16.msra.mxu0 %v404_v1  ;;  %371 = vmatpush3.bf16.msra.mxu1 %v406_v4  ;;  %v76_v11 = vld [vmem:[#allocation2] sm:$0xf]  ;;  %v410_v13 = vld [vmem:[#allocation8 + $0x20] sm:$0xff]   ;;  %v412_v15 = vld [vmem:[#allocation8 + $0x30] sm:$0xff]   ;;  %vm295_vm4 = vcmask 257024   ;;  %s566_s2 = smov [#allocation10]  }
  0x4e   :  { %358 = vmatprep.subr.bf16.mxu0 %v564_v0  ;;  %372 = vmatprep.subr.bf16.mxu1 %v564_v0  ;;  %v77_v12 = vpack.c.bf16 %v76_v11, %v76_v11  ;;  %v411_v14 = vld [vmem:[#allocation8 + $0x28] sm:$0xff]   ;;  %v413_v16 = vld [vmem:[#allocation8 + $0x38] sm:$0xff]   ;;  %s305_s20 = sshll.u32 %s566_s2, 4  ;;  %s306_s20 = int_to_ptr.vmem [resolvable:$true] %s305_s20 }
  0x4f   :  { %s504_s21 = scalar_lea.vmem %s306_s20, 64  ;;  %p509_p5 = scmp.lt.s32.totalorder %s306_s20, %s306_s20 }
  0x50   :  { %p505_p4 = scmp.ne.s32.totalorder %s306_s20, %s504_s21  ;;  %p510_p6 = scmp.lt.s32.totalorder %s504_s21, %s504_s21 }
  0x51   :  { %359 = vmatpush3.bf16.msra.mxu0 %v405_v2  ;;  %373 = vmatpush3.bf16.msra.mxu1 %v407_v7 }
  0x52   :  { %364 = vmatprep.subr.bf16.mxu0 %v564_v0  ;;  %374 = vmatprep.subr.bf16.mxu1 %v564_v0  ;;  %p511_p7 = por %p510_p6, %p509_p5 }
  0x54   :  { %361 = vmatmul.mubr.msk.bf16.vlgmr.msra.gmra.mrb[0].mxu0 %vm97_vm2, %v79_v6  ;;  %p512_p8 = pnand %p511_p7, %p505_p4 }
  0x55   :  { %365 = vmatpush3.bf16.msra.mxu0 %v147_v8  ;;  %366 = vmatprep.mubr.msk.bf16.mxu0 %vm565_vm0, %v564_v0 }
  0x56   :  { %375 = vmatpush3.bf16.msra.mxu1 %v408_v9 }
  0x57   :  { %376 = vmatprep.subr.bf16.mxu1 %v564_v0 }
  0x5a   :  { %377 = vmatpush3.bf16.msra.mxu1 %v409_v10 }
  0x5b   :  { %378 = vmatprep.subr.bf16.mxu1 %v564_v0 }
  0x5e   :  { %379 = vmatpush3.bf16.msra.mxu1 %v410_v13 }
  0x5f   :  { %380 = vmatprep.subr.bf16.mxu1 %v564_v0 }
  0x60   :  { %367 = vmatmul.mubr.msk.bf16.vlgmr.msra.gmra.mrb[0].mxu0 %vm141_vm3, %v77_v12 }
  0x62   :  { %381 = vmatpush3.bf16.msra.mxu1 %v411_v14 }
  0x63   :  { %382 = vmatprep.subr.bf16.mxu1 %v564_v0 }
  0x66   :  { %383 = vmatpush3.bf16.msra.mxu1 %v412_v15 }
  0x67   :  { %384 = vmatprep.subr.bf16.mxu1 %v564_v0 }
  0x6a   :  { %385 = vmatpush3.bf16.msra.mxu1 %v413_v16 }
 0x133   :  { %v183_v17 = vpop.f32.mrb[0].mxu0 }
 0x134   :  { %414 = vtanh.f32 %v183_v17  ;;  %v368_v18 = vpop.f32.mrb[1].mxu0 }
 0x135   :  { %v186_v19 = vpop.f32.mrb[2].mxu0 }
 0x136   :  { %v369_v20 = vpop.f32.mrb[3].mxu0 }
 0x13e   :  { %v415_v21 = vpop.eup %414 }
 0x13f   :  { %v190_v22 = vpack.c.bf16 %v415_v21, %v415_v21  ;;  %296 = vst.msk [vmem:[#allocation10] sm:$0xf] %vm295_vm4, %v415_v21 }
 0x141   :  { %387 = vmatmul.mubr.bf16.vlgmr.msra.gmra.mrb[0].mxu1 %v190_v22 }
 0x142   :  { %515 = shalt.err (!%p512_p8)
}
 0x143   :  { %s516_s25 = scalar_lea.hbm %s686_s5, 64 }
 0x144   :  { %p517_p9 = scmp.ne.s32.totalorder %s686_s5, %s516_s25  ;;  %p520_p10 = scmp.lt.u32.totalorder %s516_s25, %s686_s5 }
 0x146   :  { %p522_p11 = pnand %p520_p10, %p517_p9 }
 0x148   :  { %525 = shalt.err (!%p522_p11)
}
 0x149   :  { %308 = dma.vmem_to_hbm [thread:$0]  %s306_s20, 64, %s686_s5, [#allocation4]   ;;  %vm297_vm5 = vcmask 27648  }
 0x14a   :  { %s567_s24 = smov [#allocation11]  }
 0x14b   :  { %s315_s7 = sshll.u32 %s567_s24, 4  ;;  %s316_s7 = int_to_ptr.vmem [resolvable:$true] %s315_s7 }
 0x14c   :  { %s526_s8 = scalar_lea.vmem %s316_s7, 64  ;;  %p531_p13 = scmp.lt.s32.totalorder %s316_s7, %s316_s7 }
 0x14d   :  { %p527_p12 = scmp.ne.s32.totalorder %s316_s7, %s526_s8  ;;  %p532_p0 = scmp.lt.s32.totalorder %s526_s8, %s526_s8 }
 0x14f   :  { %p533_p1 = por %p532_p0, %p531_p13 }
 0x151   :  { %p534_p2 = pnand %p533_p1, %p527_p12 }
 0x214   :  { %v289_v23 = vpop.f32.mrb[0].mxu1 }
 0x215   :  { %v388_v24 = vpop.f32.mrb[1].mxu1  ;;  %298 = vst.msk [vmem:[#allocation11] sm:$0xf] %vm297_vm5, %v289_v23 }
 0x216   :  { %v292_v25 = vpop.f32.mrb[2].mxu1 }
 0x217   :  { %537 = shalt.err (!%p534_p2)
}
 0x218   :  { %s538_s11 = scalar_lea.hbm %s687_s6, 64 }
 0x219   :  { %p539_p3 = scmp.ne.s32.totalorder %s687_s6, %s538_s11  ;;  %p542_p4 = scmp.lt.u32.totalorder %s538_s11, %s687_s6 }
 0x21b   :  { %p544_p5 = pnand %p542_p4, %p539_p3 }
 0x21d   :  { %547 = shalt.err (!%p544_p5)
}
 0x21e   :  { %318 = dma.vmem_to_hbm [thread:$0]  %s316_s7, 64, %s687_s6, [#allocation12]   ;;  %v389_v26 = vpop.f32.mrb[3].mxu1 }
 0x21f   :  { %554 = dma.done.wait [#allocation4], 64  }
 0x220   :  { %555 = vsyncadd [#allocation4], 4294967232 }
 0x221   :  { %556 = dma.done.wait [#allocation12], 64  }
 0x222   :  { %557 = vsyncadd [#allocation12], 4294967232 }
 0x223   :  { %325 = vsyncpa [#allocation3], 1 }
 0x224   :  { %326 = vsyncpa [#allocation6], 1 }
 0x225   :  { %327 = vsyncpa [#allocation9], 1 }
 0x226   :  { %328 = vsyncpa [#allocation4], 1 }
 0x227   :  { %329 = vsyncpa [#allocation12], 1 }

</bundles_post_ra>
